<compile_context>
chip_gen: v5e
topology: v5e:2x2
jax: 0.10.0
libtpu: 0.0.40
codegen_flags: <defaults>
</compile_context>

<pallas_src>
import functools
import math

import jax
import jax.numpy as jnp
from jax.experimental import pallas as pl
from jax.experimental.pallas import tpu as pltpu

_MAX_ROW_TILE = 256          # max sublane-rows per tile
_BYPASS_BYTES = 512 * 1024   # below this, a plain XLA add beats pallas_call overhead


def _build_pe(max_len: int, d_model: int, dtype=jnp.float32) -> jnp.ndarray:
    """Deterministic positional-encoding buffer, identical to the PyTorch __init__."""
    if d_model % 2 != 0:
        raise ValueError("PositionalEncoding requires an even d_model (PyTorch 0::2/1::2 fill).")
    position = jnp.arange(max_len, dtype=jnp.float32)[:, None]              # (max_len, 1)
    div_term = jnp.exp(
        jnp.arange(0, d_model, 2, dtype=jnp.float32) * (-math.log(10000.0) / d_model)
    )                                                                        # (d_model//2,)
    angles = position * div_term                                             # (max_len, d_model//2)
    # interleave sin (even dims) and cos (odd dims)
    pe = jnp.stack([jnp.sin(angles), jnp.cos(angles)], axis=-1)              # (max_len, d/2, 2)
    return pe.reshape(max_len, d_model).astype(dtype)                        # (max_len, d_model)


@functools.lru_cache(maxsize=1)
def _budgets():
    """(tile_bytes, vmem_limit_bytes) selected per TPU generation (best-effort query)."""
    vmem_cap = 128 * 1024 * 1024
    try:
        cap = getattr(pltpu.get_tpu_info(), "vmem_capacity_bytes", None)
        if cap:
            vmem_cap = int(cap)
    except Exception:
        pass
    if vmem_cap <= 64 * 1024 * 1024:                     # v7x-class: 64 MiB VMEM, 3.2 TB/s HBM
        return 4 * 1024 * 1024, 40 * 1024 * 1024
    return 8 * 1024 * 1024, 96 * 1024 * 1024             # v5e / v6e: 128 MiB VMEM


def _pe_add_kernel(x_ref, pe_ref, o_ref):
    # x_ref / o_ref: (tb, tc) lane-dense tiles; pe_ref: (1, tc) — sublane broadcast only.
    o_ref[...] = (x_ref[...] + pe_ref[...]).astype(o_ref.dtype)


def _row_tile(n_rows: int, max_rows: int = _MAX_ROW_TILE) -> int:
    """Second-to-last block dim must be a multiple of 8 or the full extent."""
    if n_rows <= max_rows:
        return n_rows                      # full extent is always legal
    tb = max_rows - (max_rows % 8)
    while n_rows % tb != 0:                # n_rows is a multiple of 8 here (padded)
        tb -= 8
    return max(tb, 8)


def _col_tile(n_cols: int, rows: int, itemsize: int, budget_bytes: int) -> int:
    """Last block dim must be a multiple of 128; n_cols is already padded to one."""
    tc = max(128, (budget_bytes // max(rows * itemsize, 1)) // 128 * 128)
    tc = min(tc, n_cols)
    while n_cols % tc != 0:
        tc -= 128
    return max(tc, 128)


def positional_encoding_forward(
    x: jnp.ndarray,
    pe_full: jnp.ndarray,
    *,
    dropout_p: float = 0.1,
    training: bool = False,
    force_pallas: bool = False,
) -> jnp.ndarray:
    """x: (batch, seq, d_model); pe_full: (max_len, d_model)."""
    if training and dropout_p > 0.0:
        # TODO(synk): training-mode dropout not implemented in the Pallas kernel.
        raise NotImplementedError(
            "PositionalEncoding Pallas kernel implements eval-mode forward only."
        )

    B, S, D = x.shape
    if S > pe_full.shape[0]:
        raise ValueError(f"sequence length {S} exceeds max_len {pe_full.shape[0]}")

    pe = pe_full[:S]
    if pe.dtype != x.dtype:
        pe = pe.astype(x.dtype)            # callers may pre-cast once to skip this

    C = S * D
    itemsize = jnp.dtype(x.dtype).itemsize

    if not force_pallas and B * C * itemsize < _BYPASS_BYTES:
        # Tiny inputs (the module's actual shapes): launch + per-step overhead dominates;
        # a fused XLA broadcast-add is strictly faster.
        return x + pe[None, :, :]

    tile_bytes, vmem_limit = _budgets()

    # Wrapper-level, layout-only reshapes: lane-dense last dim = S*D (add is position-exact).
    x2 = x.reshape(B, C)
    pe2 = pe.reshape(1, C)

    # Pad lanes to a multiple of 128 (keeps unmasked vst + bounded tile size) and rows to a
    # multiple of 8 when B must actually be tiled.
    C_pad = ((C + 127) // 128) * 128
    B_pad = B
    if B > _MAX_ROW_TILE and B % 8 != 0:
        B_pad = ((B + 7) // 8) * 8
    if (B_pad, C_pad) != (B, C):
        x2 = jnp.pad(x2, ((0, B_pad - B), (0, C_pad - C)))
        pe2 = jnp.pad(pe2, ((0, 0), (0, C_pad - C)))

    tb = _row_tile(B_pad)
    tc = _col_tile(C_pad, tb, itemsize, tile_bytes)

    # Row axis innermost: the pe block index only changes on the (outer) column axis, so
    # Pallas keeps the pe tile resident and skips its re-DMA between consecutive steps.
    grid = (C_pad // tc, B_pad // tb)

    out_flat = pl.pallas_call(
        _pe_add_kernel,
        out_shape=jax.ShapeDtypeStruct((B_pad, C_pad), x.dtype),
        grid=grid,
        in_specs=[
            pl.BlockSpec((tb, tc), lambda j, i: (i, j)),   # x tile
            pl.BlockSpec((1, tc), lambda j, i: (0, j)),    # pe tile (resident over inner axis)
        ],
        out_specs=pl.BlockSpec((tb, tc), lambda j, i: (i, j)),
        input_output_aliases={0: 0},                       # pays off only when x is donated
        cost_estimate=pl.CostEstimate(
            flops=B_pad * C_pad,
            transcendentals=0,
            bytes_accessed=(2 * B_pad * C_pad + C_pad) * itemsize,
        ),
        compiler_params=pltpu.CompilerParams(
            dimension_semantics=("parallel", "parallel"),
            vmem_limit_bytes=vmem_limit,
        ),
    )(x2, pe2)

    if (B_pad, C_pad) != (B, C):
        out_flat = out_flat[:B, :C]
    return out_flat.reshape(B, S, D)


if __name__ == "__main__":
    d_model = 32
    max_len = 5000
    pe_full = _build_pe(max_len, d_model)

    key = jax.random.PRNGKey(0)
    k1, k2, k3 = jax.random.split(key, 3)

    # 1) Module-sized input (batch=2, seq=8, d_model=32): tiny -> XLA bypass path.
    x_small = jax.random.normal(k1, (2, 8, d_model), dtype=jnp.float32)
    ref_small = x_small + pe_full[:8][None, :, :]
    out_small = jax.block_until_ready(positional_encoding_forward(x_small, pe_full))
    assert out_small.shape == x_small.shape
    assert jnp.allclose(out_small, ref_small, atol=1e-6, rtol=1e-6)

    # 2) Same tiny shape forced through the Pallas kernel (single-tile grid, full-extent rows).
    out_forced = jax.block_until_ready(
        positional_encoding_forward(x_small, pe_full, force_pallas=True)
    )
    assert jnp.allclose(out_forced, ref_small, atol=1e-6, rtol=1e-6)

    # 3) Non-128-multiple S*D (=400) exercises the lane-padding path.
    pe_full40 = _build_pe(max_len, 40)
    x_pad = jax.random.normal(k2, (16, 10, 40), dtype=jnp.float32)
    ref_pad = x_pad + pe_full40[:10][None, :, :]
    out_pad = jax.block_until_ready(
        positional_encoding_forward(x_pad, pe_full40, force_pallas=True)
    )
    assert out_pad.shape == x_pad.shape
    assert jnp.allclose(out_pad, ref_pad, atol=1e-6, rtol=1e-6)

    # 4) Larger batch takes the Pallas path naturally with a multi-step grid
    #    (row axis innermost -> pe tile stays resident across steps).
    x_big = jax.random.normal(k3, (512, 64, d_model), dtype=jnp.float32)
    ref_big = x_big + pe_full[:64][None, :, :]
    out_big = jax.block_until_ready(positional_encoding_forward(x_big, pe_full))
    assert out_big.shape == x_big.shape
    assert jnp.allclose(out_big, ref_big, atol=1e-6, rtol=1e-6)

    print("KERNEL_OK")
</pallas_src>

<mosaic_0001>
module attributes {stable_mosaic.version = 11 : i64} {
  func.func @_pe_add_kernel(%arg0: i32, %arg1: i32, %arg2: memref<2x256xf32, #tpu.memory_space<vmem>>, %arg3: memref<1x256xf32, #tpu.memory_space<vmem>>, %arg4: memref<2x256xf32, #tpu.memory_space<vmem>>) attributes {dimension_semantics = [#tpu.dimension_semantics<parallel>, #tpu.dimension_semantics<parallel>], iteration_bounds = array<i64: 1, 1>, scalar_prefetch = 0 : i64, scratch_operands = 0 : i64, tpu.core_type = #tpu.core_type<tc>, window_params = [{transform_indices = @transform_0, window_bounds = array<i64: 2, 256>}, {transform_indices = @transform_1, window_bounds = array<i64: 1, 256>}, {transform_indices = @transform_2, window_bounds = array<i64: 2, 256>}]} {
    %c0 = arith.constant 0 : index
    %c0_0 = arith.constant 0 : index
    %0 = vector.load %arg2[%c0, %c0_0] : memref<2x256xf32, #tpu.memory_space<vmem>>, vector<2x256xf32>
    %c0_1 = arith.constant 0 : index
    %c0_2 = arith.constant 0 : index
    %1 = vector.load %arg3[%c0_1, %c0_2] : memref<1x256xf32, #tpu.memory_space<vmem>>, vector<1x256xf32>
    %2 = vector.broadcast %1 : vector<1x256xf32> to vector<2x256xf32>
    %3 = arith.addf %0, %2 : vector<2x256xf32>
    %c0_3 = arith.constant 0 : index
    %c0_4 = arith.constant 0 : index
    %4 = vector.load %arg4[%c0_3, %c0_4] : memref<2x256xf32, #tpu.memory_space<vmem>>, vector<2x256xf32>
    tpu.vector_store %arg4[%c0_3, %c0_4], %3 {strides = array<i32>} : memref<2x256xf32, #tpu.memory_space<vmem>>, vector<2x256xf32>,
    return
  }
  func.func @transform_0(%arg0: i32, %arg1: i32) -> (i32, i32) {
    %c0_i32 = arith.constant 0 : i32
    return %arg1, %arg0 : i32, i32
  }
  func.func @transform_1(%arg0: i32, %arg1: i32) -> (i32, i32) {
    %c0_i32 = arith.constant 0 : i32
    %c0_i32_0 = arith.constant 0 : i32
    return %c0_i32, %arg0 : i32, i32
  }
  func.func @transform_2(%arg0: i32, %arg1: i32) -> (i32, i32) {
    %c0_i32 = arith.constant 0 : i32
    return %arg1, %arg0 : i32, i32
  }
}

</mosaic_0001>

<bundles_post_ra>
// kernel: tpu_custom_call.1
= control target key start
LH: loop header
LB: loop body
LE: loop exit
PB: predicated region body
PF: predicated region fallthrough
CT: control target
= control target key end

     0   :  { %7 = vsyncpa [#allocation3], 0  ;;  %s134_s0 = inlined_call_operand.hbm [shape: f32[2,256], index: 0, kind: input, shape index: {}, may-alias: {0,2}]   ;;  %s135_s1 = inlined_call_operand.vmem [shape: f32[1,256], index: 1, kind: input, shape index: {}]   ;;  %s136_s2 = inlined_call_operand.hbm [shape: f32[2,256], index: 2, kind: output, shape index: {}, may-alias: {0,2}]  }
   0x1   :  { %8 = vsyncpa [#allocation4], 0  ;;  %s14_s11 = sshll.u32 %s134_s0, 4  ;;  %s108_s12 = smov [#allocation2]   ;;  %s15_s11 = int_to_ptr.hbm [resolvable:$true] %s14_s11 }
   0x2   :  { %s16_s13 = sshll.u32 %s108_s12, 4  ;;  %s17_s13 = int_to_ptr.vmem [resolvable:$true] %s16_s13 }
   0x3   :  { %19 = dma.hbm_to_vmem [thread:$0]  %s15_s11, 64, %s17_s13, [#allocation3]  }
   0x4   :  { %104 = dma.done.wait [#allocation3], 64  }
   0x5   :  { %105 = vsyncadd [#allocation3], 4294967232  ;;  %v27_v0 = vld [vmem:[%s135_s1] sm:$0x3]  ;;  %vm32_vm0 = vcmask 1041408   ;;  %s109_s16 = smov [#allocation5]  }
   0x6   :  { %v29_v1 = vperm.slane %v27_v0, 0  ;;  %v30_v2 = vperm.slane %v27_v0, 1  ;;  %v26_v3 = vld [vmem:[#allocation2] sm:$0xf]  ;;  %s42_s17 = sshll.u32 %s109_s16, 4  ;;  %s44_s19 = sshll.u32 %s136_s2, 4  ;;  %s43_s17 = int_to_ptr.vmem [resolvable:$true] %s42_s17  ;;  %s45_s19 = int_to_ptr.hbm [resolvable:$true] %s44_s19 }
   0x8   :  { %v31_v4 = vrot.slane %v30_v2, 6 }
   0xa   :  { %v33_v5 = vsel %vm32_vm0, %v29_v1, %v31_v4 }
   0xb   :  { %v35_v6 = vadd.f32 %v33_v5, %v26_v3 }
   0xd   :  { %36 = vst [vmem:[#allocation5] sm:$0xf] %v35_v6 }
   0xe   :  { %47 = dma.vmem_to_hbm [thread:$0]  %s43_s17, 64, %s45_s19, [#allocation4]  }
   0xf   :  { %106 = dma.done.wait [#allocation4], 64  }
  0x10   :  { %107 = vsyncadd [#allocation4], 4294967232 }
  0x11   :  { %52 = vsyncpa [#allocation3], 1 }
  0x12   :  { %53 = vsyncpa [#allocation4], 1 }

</bundles_post_ra>
